<compile_context>
chip_gen: v6e
topology: v6e:2x2x1
jax: 0.10.0
libtpu: 0.0.40
codegen_flags: <defaults>
</compile_context>

<pallas_src>
import functools
import math

import jax
import jax.numpy as jnp
from jax import lax
from jax.experimental import pallas as pl
from jax.experimental.pallas import tpu as pltpu

# ---- ArcFace constants (match the PyTorch module defaults) ----
IN_FEATURES = 128
OUT_FEATURES = 100
S = 30.0
M = 0.5
COS_M = math.cos(M)
SIN_M = math.sin(M)
TH = math.cos(math.pi - M)
MM = math.sin(math.pi - M) * M
EPS = 1e-12  # F.normalize default eps

# Cast matmul operands to bf16 once the matmul is no longer negligible.
_BF16_THRESHOLD = 512 * 512


def arccos_kernel(x_ref, w_ref, label_ref, out_ref, *, use_bf16):
    # x: (TB, D) VMEM, w: (OUT_PAD, D) VMEM, label: (TB, 1) int32 VMEM,
    # out: (TB, OUT_PAD) VMEM
    x = x_ref[...]
    w = w_ref[...]

    # F.normalize(x, dim=1): x / max(||x||, eps) == x * rsqrt(max(||x||^2, eps^2))
    # rsqrt goes to the EUP slot; turns divides into VPU multiplies.
    x_inv = lax.rsqrt(jnp.maximum(jnp.sum(x * x, axis=-1, keepdims=True), EPS * EPS))
    x_n = x * x_inv

    # F.normalize(W, dim=1) — zero padding rows normalize safely to zero.
    w_inv = lax.rsqrt(jnp.maximum(jnp.sum(w * w, axis=-1, keepdims=True), EPS * EPS))
    w_n = w * w_inv

    if use_bf16:
        # Native MXU path on v5e/v6e/v7x; accumulate in f32.
        x_n = x_n.astype(jnp.bfloat16)
        w_n = w_n.astype(jnp.bfloat16)

    # cosine = x_n @ w_n^T without materializing the transpose:
    # contract the last dim of both operands directly on the MXU.
    cosine = lax.dot_general(
        x_n, w_n,
        dimension_numbers=(((1,), (1,)), ((), ())),
        preferred_element_type=jnp.float32,
    )  # (TB, OUT_PAD) f32

    # sine = sqrt(max(1 - cosine^2, 0))  (upper clip is redundant)
    sine = jnp.sqrt(jnp.maximum(1.0 - cosine * cosine, 0.0))

    # phi = cos(theta + m), with easy-margin-off fallback
    phi = cosine * COS_M - sine * SIN_M
    phi = jnp.where(cosine > TH, phi, cosine - MM)

    # one-hot blend as a single select against the label column (no float one-hot,
    # no per-row serial chain). Padded columns never match -> stay at cosine (=0).
    TB, OUT_PAD = out_ref.shape
    col = lax.broadcasted_iota(jnp.int32, (TB, OUT_PAD), 1)
    mask = col == label_ref[...]  # (TB, OUT_PAD) bool via broadcast of (TB, 1)

    out_ref[...] = (jnp.where(mask, phi, cosine) * S).astype(out_ref.dtype)


def pad_weight(weight):
    """Pad out_features up to a multiple of 128 ONCE (call at init, not per step)."""
    out, _ = weight.shape
    out_pad = ((out + 127) // 128) * 128
    if out_pad != out:
        # Zero rows normalize to zero under the eps guard -> padded cosine
        # columns are exactly 0 and are sliced away in arccos_forward.
        weight = jnp.pad(weight, ((0, out_pad - out), (0, 0)))
    return weight


def arccos_forward(x, w_pad, label, out_features):
    """x: (B, D) f32, w_pad: (OUT_PAD, D) f32 pre-padded via pad_weight,
    label: (B,) integer class indices. Returns (B, out_features) f32."""
    B, D = x.shape
    OUT_PAD, Dw = w_pad.shape
    assert Dw == D and OUT_PAD % 128 == 0, "weight must be pre-padded via pad_weight"

    # Row tile: multiple of 8 (sublane), capped so big batches pipeline/shard.
    TB = min(256, ((B + 7) // 8) * 8)
    B_PAD = ((B + TB - 1) // TB) * TB
    if B_PAD != B:
        x = jnp.pad(x, ((0, B_PAD - B), (0, 0)))
        label = jnp.pad(label, (0, B_PAD - B))
    label_col = label.astype(jnp.int32).reshape(B_PAD, 1)

    use_bf16 = (B_PAD * OUT_PAD) >= _BF16_THRESHOLD
    kernel = functools.partial(arccos_kernel, use_bf16=use_bf16)

    # Advisory cost so XLA can overlap the custom call with neighbors.
    cost = pl.CostEstimate(
        flops=2 * B_PAD * OUT_PAD * D + 12 * B_PAD * OUT_PAD,
        transcendentals=B_PAD + OUT_PAD + B_PAD * OUT_PAD,  # rsqrt + sqrt
        bytes_accessed=4 * (B_PAD * D + OUT_PAD * D + B_PAD + B_PAD * OUT_PAD),
    )

    out_pad = pl.pallas_call(
        kernel,
        out_shape=jax.ShapeDtypeStruct((B_PAD, OUT_PAD), jnp.float32),
        grid=(B_PAD // TB,),
        in_specs=[
            pl.BlockSpec((TB, D), lambda i: (i, 0)),        # x row tile
            pl.BlockSpec((OUT_PAD, D), lambda i: (0, 0)),   # weight, grid-invariant
            pl.BlockSpec((TB, 1), lambda i: (i, 0)),        # label column tile
        ],
        out_specs=pl.BlockSpec((TB, OUT_PAD), lambda i: (i, 0)),
        compiler_params=pltpu.CompilerParams(
            dimension_semantics=("parallel",),  # v7x: shard row tiles over 2 TCs
        ),
        cost_estimate=cost,
    )(x, w_pad, label_col)

    return out_pad[:B, :out_features]


def reference_forward(x, weight, label):
    # pure-JAX reference for sanity check (mirrors the PyTorch forward)
    x_n = x / jnp.maximum(jnp.linalg.norm(x, axis=-1, keepdims=True), EPS)
    w_n = weight / jnp.maximum(jnp.linalg.norm(weight, axis=-1, keepdims=True), EPS)
    cosine = x_n @ w_n.T
    sine = jnp.sqrt(jnp.clip(1.0 - cosine ** 2, 0.0, 1.0))
    phi = cosine * COS_M - sine * SIN_M
    phi = jnp.where(cosine > TH, phi, cosine - MM)
    one_hot = jax.nn.one_hot(label, weight.shape[0], dtype=jnp.float32)
    return (one_hot * phi + (1.0 - one_hot) * cosine) * S


if __name__ == "__main__":
    B = 8
    key = jax.random.PRNGKey(0)
    kx, kw, kl = jax.random.split(key, 3)

    # deterministic input features
    x = jax.random.normal(kx, (B, IN_FEATURES), dtype=jnp.float32)

    # kaiming_uniform_(a=sqrt(5)) => U(-1/sqrt(fan_in), 1/sqrt(fan_in))
    bound = 1.0 / math.sqrt(IN_FEATURES)
    weight = jax.random.uniform(
        kw, (OUT_FEATURES, IN_FEATURES), dtype=jnp.float32, minval=-bound, maxval=bound
    )

    label = jax.random.randint(kl, (B,), 0, OUT_FEATURES, dtype=jnp.int32)

    # Pad the weight ONCE (module-init analogue), not per forward call.
    w_pad = jax.block_until_ready(pad_weight(weight))

    out = arccos_forward(x, w_pad, label, OUT_FEATURES)
    out = jax.block_until_ready(out)

    ref = reference_forward(x, weight, label)
    assert out.shape == (B, OUT_FEATURES)
    assert jnp.allclose(out, ref, atol=1e-3, rtol=1e-3), "mismatch vs reference"

    print("KERNEL_OK")
</pallas_src>

<mosaic_0001>
module attributes {stable_mosaic.version = 11 : i64} {
  func.func @arccos_kernel(%arg0: i32, %arg1: memref<8x128xf32, #tpu.memory_space<vmem>>, %arg2: memref<128x128xf32, #tpu.memory_space<vmem>>, %arg3: memref<8x1xi32, #tpu.memory_space<vmem>>, %arg4: memref<8x128xf32, #tpu.memory_space<vmem>>) attributes {dimension_semantics = [#tpu.dimension_semantics<parallel>], iteration_bounds = array<i64: 1>, scalar_prefetch = 0 : i64, scratch_operands = 0 : i64, tpu.core_type = #tpu.core_type<tc>, window_params = [{transform_indices = @transform_0, window_bounds = array<i64: 8, 128>}, {pipeline_mode = #tpu.pipeline_mode<synchronous>, transform_indices = @transform_1, window_bounds = array<i64: 128, 128>}, {transform_indices = @transform_2, window_bounds = array<i64: 8, 1>}, {transform_indices = @transform_3, window_bounds = array<i64: 8, 128>}]} {
    %c0 = arith.constant 0 : index
    %c0_0 = arith.constant 0 : index
    %0 = vector.load %arg1[%c0, %c0_0] : memref<8x128xf32, #tpu.memory_space<vmem>>, vector<8x128xf32>
    %c0_1 = arith.constant 0 : index
    %c0_2 = arith.constant 0 : index
    %1 = vector.load %arg2[%c0_1, %c0_2] : memref<128x128xf32, #tpu.memory_space<vmem>>, vector<128x128xf32>
    %2 = arith.mulf %0, %0 : vector<8x128xf32>
    %cst = arith.constant dense<0.000000e+00> : vector<8xf32>
    %3 = vector.multi_reduction <add>, %2, %cst [1] : vector<8x128xf32> to vector<8xf32>
    %4 = vector.shape_cast %3 : vector<8xf32> to vector<8x1xf32>
    %cst_3 = arith.constant 1.000000e-24 : f32
    %5 = vector.broadcast %cst_3 : f32 to vector<8x1xf32>
    %6 = arith.maximumf %4, %5 : vector<8x1xf32>
    %7 = math.rsqrt %6 : vector<8x1xf32>
    %8 = vector.broadcast %7 : vector<8x1xf32> to vector<8x128xf32>
    %9 = arith.mulf %0, %8 : vector<8x128xf32>
    %10 = arith.mulf %1, %1 : vector<128x128xf32>
    %cst_4 = arith.constant dense<0.000000e+00> : vector<128xf32>
    %11 = vector.multi_reduction <add>, %10, %cst_4 [1] : vector<128x128xf32> to vector<128xf32>
    %12 = vector.shape_cast %11 : vector<128xf32> to vector<128x1xf32>
    %cst_5 = arith.constant 1.000000e-24 : f32
    %13 = vector.broadcast %cst_5 : f32 to vector<128x1xf32>
    %14 = arith.maximumf %12, %13 : vector<128x1xf32>
    %15 = math.rsqrt %14 : vector<128x1xf32>
    %16 = vector.broadcast %15 : vector<128x1xf32> to vector<128x128xf32>
    %17 = arith.mulf %1, %16 : vector<128x128xf32>
    %cst_6 = arith.constant dense<0.000000e+00> : vector<8x128xf32>
    %18 = tpu.matmul %9, %17, %cst_6 {dimension_numbers = #tpu.dot_dimension_numbers<[1], [1], [0], [0], [0, 0, 1, 0], [], []>} : vector<8x128xf32>, vector<128x128xf32>, vector<8x128xf32> -> vector<8x128xf32>
    %19 = arith.mulf %18, %18 : vector<8x128xf32>
    %cst_7 = arith.constant 1.000000e+00 : f32
    %20 = vector.broadcast %cst_7 : f32 to vector<8x128xf32>
    %21 = arith.subf %20, %19 : vector<8x128xf32>
    %cst_8 = arith.constant 0.000000e+00 : f32
    %22 = vector.broadcast %cst_8 : f32 to vector<8x128xf32>
    %23 = arith.maximumf %21, %22 : vector<8x128xf32>
    %24 = math.sqrt %23 : vector<8x128xf32>
    %cst_9 = arith.constant 0.87758255 : f32
    %25 = vector.broadcast %cst_9 : f32 to vector<8x128xf32>
    %26 = arith.mulf %18, %25 : vector<8x128xf32>
    %cst_10 = arith.constant 0.47942555 : f32
    %27 = vector.broadcast %cst_10 : f32 to vector<8x128xf32>
    %28 = arith.mulf %24, %27 : vector<8x128xf32>
    %29 = arith.subf %26, %28 : vector<8x128xf32>
    %cst_11 = arith.constant -0.87758255 : f32
    %30 = vector.broadcast %cst_11 : f32 to vector<8x128xf32>
    %31 = arith.cmpf ogt, %18, %30 : vector<8x128xf32>
    %cst_12 = arith.constant 0.239712775 : f32
    %32 = vector.broadcast %cst_12 : f32 to vector<8x128xf32>
    %33 = arith.subf %18, %32 : vector<8x128xf32>
    %34 = arith.select %31, %29, %33 : vector<8x128xi1>, vector<8x128xf32>
    %35 = tpu.iota {dimensions = array<i32: 1>} : vector<8x128xi32>
    %c0_13 = arith.constant 0 : index
    %c0_14 = arith.constant 0 : index
    %36 = vector.load %arg3[%c0_13, %c0_14] : memref<8x1xi32, #tpu.memory_space<vmem>>, vector<8x1xi32>
    %37 = vector.broadcast %36 : vector<8x1xi32> to vector<8x128xi32>
    %38 = arith.cmpi eq, %35, %37 : vector<8x128xi32>
    %39 = arith.select %38, %34, %18 : vector<8x128xi1>, vector<8x128xf32>
    %cst_15 = arith.constant 3.000000e+01 : f32
    %40 = vector.broadcast %cst_15 : f32 to vector<8x128xf32>
    %41 = arith.mulf %39, %40 : vector<8x128xf32>
    %c0_16 = arith.constant 0 : index
    %c0_17 = arith.constant 0 : index
    %42 = vector.load %arg4[%c0_16, %c0_17] : memref<8x128xf32, #tpu.memory_space<vmem>>, vector<8x128xf32>
    tpu.vector_store %arg4[%c0_16, %c0_17], %41 {strides = array<i32>} : memref<8x128xf32, #tpu.memory_space<vmem>>, vector<8x128xf32>,
    return
  }
  func.func @transform_0(%arg0: i32) -> (i32, i32) {
    %c0_i32 = arith.constant 0 : i32
    %c0_i32_0 = arith.constant 0 : i32
    return %arg0, %c0_i32 : i32, i32
  }
  func.func @transform_1(%arg0: i32) -> (i32, i32) {
    %c0_i32 = arith.constant 0 : i32
    %c0_i32_0 = arith.constant 0 : i32
    %c0_i32_1 = arith.constant 0 : i32
    return %c0_i32, %c0_i32_0 : i32, i32
  }
  func.func @transform_2(%arg0: i32) -> (i32, i32) {
    %c0_i32 = arith.constant 0 : i32
    %c0_i32_0 = arith.constant 0 : i32
    return %arg0, %c0_i32 : i32, i32
  }
  func.func @transform_3(%arg0: i32) -> (i32, i32) {
    %c0_i32 = arith.constant 0 : i32
    %c0_i32_0 = arith.constant 0 : i32
    return %arg0, %c0_i32 : i32, i32
  }
}

</mosaic_0001>

<bundles_post_ra>
// kernel: tpu_custom_call.1
= control target key start
LH: loop header
LB: loop body
LE: loop exit
PB: predicated region body
PF: predicated region fallthrough
CT: control target
= control target key end

     0   :  { %8 = vsyncpa [#allocation3], 0  ;;  %s542_s0 = inlined_call_operand.vmem [shape: f32[8,128], index: 0, kind: input, shape index: {}]   ;;  %s543_s1 = inlined_call_operand.hbm [shape: f32[128,128], index: 1, kind: input, shape index: {}]   ;;  %s544_s2 = inlined_call_operand.vmem [shape: s32[8,1], index: 2, kind: input, shape index: {}]   ;;  %s545_s3 = inlined_call_operand.hbm [shape: f32[8,128], index: 3, kind: output, shape index: {}]  }
   0x1   :  { %9 = vsyncpa [#allocation4], 0  ;;  %s401_s12 = smov [#allocation2]  }
   0x2   :  { %s17_s13 = sshll.u32 %s401_s12, 4  ;;  %s18_s13 = int_to_ptr.vmem [resolvable:$true] %s17_s13 }
   0x3   :  { %s365_s14 = scalar_lea.vmem %s18_s13, 2048  ;;  %p370_p1 = scmp.lt.s32.totalorder %s18_s13, %s18_s13 }
   0x4   :  { %p366_p0 = scmp.ne.s32.totalorder %s18_s13, %s365_s14  ;;  %p371_p2 = scmp.lt.s32.totalorder %s365_s14, %s365_s14 }
   0x6   :  { %p372_p3 = por %p371_p2, %p370_p1 }
   0x8   :  { %p373_p4 = pnand %p372_p3, %p366_p0 }
   0xa   :  { %376 = shalt.err (!%p373_p4)
}
   0xb   :  { %s402_s15 = smov 128   ;;  %s403_s16 = smov 8  }
   0xc   :  { %23 = dma.hbm_to_vmem [thread:$0]  %s543_s1, 2048, %s18_s13, [#allocation3], %s402_s15, %s402_s15, %s403_s16  }
   0xd   :  { %397 = dma.done.wait [#allocation3], 2048  }
   0xe   :  { %398 = vsyncadd [#allocation3], 4294965248  ;;  %v431_v0 = vld [vmem:[#allocation2 + $0x78] sm:$0xff]  ;;  %v433_v1 = vld [vmem:[#allocation2 + $0x70] sm:$0xff]  ;;  %v404_v30 = vmov 0.0   ;;  %vm405_vm0 = vmmov 0  }
   0xf   :  { %v435_v2 = vld [vmem:[#allocation2 + $0x68] sm:$0xff]  ;;  %v67_v3 = vmul.f32 %v431_v0, %v431_v0  ;;  %v441_v5 = vld [vmem:[#allocation2 + $0x60] sm:$0xff]  ;;  %v66_v6 = vmul.f32 %v433_v1, %v433_v1  ;;  %v447_v8 = vld [vmem:[#allocation2 + $0x58] sm:$0xff]  ;;  %277 = vmatprep.subr.mxu0 %v404_v30  ;;  %309 = vmatprep.mubr.msk.f32.mxu0 %vm405_vm0, %v404_v30  ;;  %v406_v36 = vmov 0  }
  0x10   :  { %v65_v4 = vmul.f32 %v435_v2, %v435_v2  ;;  %v64_v7 = vmul.f32 %v441_v5, %v441_v5  ;;  %v449_v9 = vld [vmem:[#allocation2 + $0x50] sm:$0xff]  ;;  %v63_v10 = vmul.f32 %v447_v8, %v447_v8  ;;  %v455_v12 = vld [vmem:[#allocation2 + $0x48] sm:$0xff]  ;;  %v457_v13 = vld [vmem:[#allocation2 + $0x40] sm:$0xff]  ;;  %319 = vset.pattern.permute.xlu1 %v406_v36  ;;  %320 = vset.pattern.permute.xlu0 %v406_v36 }
  0x11   :  { %98 = vadd.xlane.f32.xlu0 %v67_v3  ;;  %v62_v11 = vmul.f32 %v449_v9, %v449_v9  ;;  %v61_v14 = vmul.f32 %v455_v12, %v455_v12  ;;  %v60_v15 = vmul.f32 %v457_v13, %v457_v13  ;;  %v463_v16 = vld [vmem:[#allocation2 + $0x38] sm:$0xff]  ;;  %v465_v17 = vld [vmem:[#allocation2 + $0x30] sm:$0xff]  ;;  %v471_v20 = vld [vmem:[#allocation2 + $0x28] sm:$0xff] }
  0x12   :  { %94 = vadd.xlane.f32.xlu1 %v65_v4  ;;  %v59_v18 = vmul.f32 %v463_v16, %v463_v16  ;;  %v58_v19 = vmul.f32 %v465_v17, %v465_v17  ;;  %v473_v21 = vld [vmem:[#allocation2 + $0x20] sm:$0xff]  ;;  %v57_v22 = vmul.f32 %v471_v20, %v471_v20  ;;  %v479_v24 = vld [vmem:[#allocation2 + $0x18] sm:$0xff]  ;;  %v481_v25 = vld [vmem:[#allocation2 + $0x10] sm:$0xff] }
  0x13   :  { %v56_v23 = vmul.f32 %v473_v21, %v473_v21  ;;  %v55_v26 = vmul.f32 %v479_v24, %v479_v24  ;;  %v54_v27 = vmul.f32 %v481_v25, %v481_v25  ;;  %v487_v28 = vld [vmem:[#allocation2 + $0x8] sm:$0xff]  ;;  %v489_v29 = vld [vmem:[#allocation2] sm:$0xff] }
  0x14   :  { %v53_v31 = vmul.f32 %v487_v28, %v487_v28  ;;  %v52_v32 = vmul.f32 %v489_v29, %v489_v29  ;;  %v499_v33 = vld [vmem:[%s542_s0] sm:$0xff]  ;;  %s407_s0 = smov [#allocation5]  }
  0x15   :  { %96 = vadd.xlane.f32.xlu0 %v66_v6  ;;  %v46_v34 = vmul.f32 %v499_v33, %v499_v33  ;;  %v236_v35 = vld [vmem:[%s544_s2] sm:$0xff]  ;;  %s250_s2 = sshll.u32 %s407_s0, 4  ;;  %s251_s2 = int_to_ptr.vmem [resolvable:$true] %s250_s2 }
  0x16   :  { %92 = vadd.xlane.f32.xlu1 %v64_v7  ;;  %s377_s22 = scalar_lea.vmem %s251_s2, 128  ;;  %p382_p6 = scmp.lt.s32.totalorder %s251_s2, %s251_s2 }
  0x17   :  { %p378_p5 = scmp.ne.s32.totalorder %s251_s2, %s377_s22  ;;  %p383_p7 = scmp.lt.s32.totalorder %s377_s22, %s377_s22 }
  0x19   :  { %90 = vadd.xlane.f32.xlu0 %v63_v10  ;;  %p384_p8 = por %p383_p7, %p382_p6 }
  0x1a   :  { %88 = vadd.xlane.f32.xlu1 %v62_v11 }
  0x1b   :  { %p385_p9 = pnand %p384_p8, %p378_p5 }
  0x1d   :  { %86 = vadd.xlane.f32.xlu0 %v61_v14 }
  0x1e   :  { %84 = vadd.xlane.f32.xlu1 %v60_v15 }
  0x21   :  { %82 = vadd.xlane.f32.xlu0 %v59_v18 }
  0x22   :  { %80 = vadd.xlane.f32.xlu1 %v58_v19 }
  0x25   :  { %78 = vadd.xlane.f32.xlu0 %v57_v22 }
  0x26   :  { %76 = vadd.xlane.f32.xlu1 %v56_v23 }
  0x29   :  { %74 = vadd.xlane.f32.xlu0 %v55_v26 }
  0x2a   :  { %72 = vadd.xlane.f32.xlu1 %v54_v27 }
  0x2d   :  { %70 = vadd.xlane.f32.xlu0 %v53_v31 }
  0x2e   :  { %68 = vadd.xlane.f32.xlu1 %v52_v32 }
  0x31   :  { %47 = vadd.xlane.f32.xlu0 %v46_v34 }
  0x3f   :  { %238 = vperm.xlu1 %319, %v236_v35  }
  0x9a   :  { %v99_v37 = vpop.xlane.xlu0 %98 }
  0x9b   :  { %v95_v38 = vpop.xlane.xlu1 %94  ;;  %v115_v39 = vmax.f32 %v99_v37, 1e-24 }
  0x9c   :  { %v113_v40 = vmax.f32 %v95_v38, 1e-24 }
  0x9d   :  { %321 = vrsqrt.f32 %v115_v39 }
  0x9e   :  { %v97_v41 = vpop.xlane.xlu0 %96  ;;  %323 = vrsqrt.f32 %v113_v40 }
  0x9f   :  { %v93_v42 = vpop.xlane.xlu1 %92  ;;  %v114_v43 = vmax.f32 %v97_v41, 1e-24 }
  0xa0   :  { %v112_v44 = vmax.f32 %v93_v42, 1e-24 }
  0xa1   :  { %325 = vrsqrt.f32 %v114_v43 }
  0xa2   :  { %v91_v45 = vpop.xlane.xlu0 %90  ;;  %327 = vrsqrt.f32 %v112_v44 }
  0xa3   :  { %v111_v46 = vmax.f32 %v91_v45, 1e-24  ;;  %v89_v47 = vpop.xlane.xlu1 %88 }
  0xa4   :  { %v110_v48 = vmax.f32 %v89_v47, 1e-24 }
  0xa5   :  { %329 = vrsqrt.f32 %v111_v46 }
  0xa6   :  { %v87_v50 = vpop.xlane.xlu0 %86  ;;  %331 = vrsqrt.f32 %v110_v48 }
  0xa7   :  { %v109_v53 = vmax.f32 %v87_v50, 1e-24  ;;  %v85_v55 = vpop.xlane.xlu1 %84 }
  0xa8   :  { %v108_v58 = vmax.f32 %v85_v55, 1e-24 }
  0xa9   :  { %333 = vrsqrt.f32 %v109_v53 }
  0xaa   :  { %v322_v49 = vpop.eup %321  ;;  %v83_v60 = vpop.xlane.xlu0 %82  ;;  %335 = vrsqrt.f32 %v108_v58 }
  0xab   :  { %v147_v51 = vmul.f32 %v322_v49, %v431_v0  ;;  %v324_v52 = vpop.eup %323  ;;  %v107_v62 = vmax.f32 %v83_v60, 1e-24  ;;  %v81_v0 = vpop.xlane.xlu1 %80 }
  0xac   :  { %v145_v57 = vmul.f32 %v324_v52, %v435_v2  ;;  %v106_v3 = vmax.f32 %v81_v0, 1e-24 }
  0xad   :  { %278 = vmatpush3.xpose.msra.mxu0 %v147_v51  ;;  %337 = vrsqrt.f32 %v107_v62 }
  0xae   :  { %v326_v54 = vpop.eup %325  ;;  %279 = vmatprep.subr.mxu0 %v404_v30  ;;  %v79_v4 = vpop.xlane.xlu0 %78  ;;  %339 = vrsqrt.f32 %v106_v3 }
  0xaf   :  { %v146_v56 = vmul.f32 %v326_v54, %v433_v1  ;;  %v328_v59 = vpop.eup %327  ;;  %v105_v7 = vmax.f32 %v79_v4, 1e-24  ;;  %v77_v10 = vpop.xlane.xlu1 %76 }
  0xb0   :  { %v144_v61 = vmul.f32 %v328_v59, %v441_v5  ;;  %v104_v14 = vmax.f32 %v77_v10, 1e-24 }
  0xb1   :  { %280 = vmatpush3.xpose.msra.mxu0 %v146_v56  ;;  %341 = vrsqrt.f32 %v105_v7 }
  0xb2   :  { %281 = vmatprep.subr.mxu0 %v404_v30  ;;  %v330_v63 = vpop.eup %329  ;;  %v75_v15 = vpop.xlane.xlu0 %74  ;;  %343 = vrsqrt.f32 %v104_v14 }
  0xb3   :  { %v143_v1 = vmul.f32 %v330_v63, %v447_v8  ;;  %v332_v2 = vpop.eup %331  ;;  %v103_v19 = vmax.f32 %v75_v15, 1e-24  ;;  %v73_v22 = vpop.xlane.xlu1 %72 }
  0xb4   :  { %v142_v6 = vmul.f32 %v332_v2, %v449_v9  ;;  %v102_v26 = vmax.f32 %v73_v22, 1e-24 }
  0xb5   :  { %282 = vmatpush3.xpose.msra.mxu0 %v145_v57  ;;  %345 = vrsqrt.f32 %v103_v19 }
  0xb6   :  { %283 = vmatprep.subr.mxu0 %v404_v30  ;;  %v334_v5 = vpop.eup %333  ;;  %v71_v27 = vpop.xlane.xlu0 %70  ;;  %347 = vrsqrt.f32 %v102_v26 }
  0xb7   :  { %v141_v11 = vmul.f32 %v334_v5, %v455_v12  ;;  %v336_v8 = vpop.eup %335  ;;  %v101_v32 = vmax.f32 %v71_v27, 1e-24  ;;  %v69_v34 = vpop.xlane.xlu1 %68 }
  0xb8   :  { %v140_v18 = vmul.f32 %v336_v8, %v457_v13  ;;  %v100_v36 = vmax.f32 %v69_v34, 1e-24 }
  0xb9   :  { %284 = vmatpush3.xpose.msra.mxu0 %v144_v61  ;;  %349 = vrsqrt.f32 %v101_v32 }
  0xba   :  { %285 = vmatprep.subr.mxu0 %v404_v30  ;;  %v338_v9 = vpop.eup %337  ;;  %351 = vrsqrt.f32 %v100_v36 }
  0xbb   :  { %v139_v23 = vmul.f32 %v338_v9, %v463_v16  ;;  %v340_v12 = vpop.eup %339  ;;  %v48_v16 = vpop.xlane.xlu0 %47 }
  0xbc   :  { %v138_v31 = vmul.f32 %v340_v12, %v465_v17  ;;  %v49_v38 = vmax.f32 %v48_v16, 1e-24 }
  0xbd   :  { %286 = vmatpush3.xpose.msra.mxu0 %v143_v1 }
  0xbe   :  { %287 = vmatprep.subr.mxu0 %v404_v30  ;;  %v342_v13 = vpop.eup %341  ;;  %353 = vrsqrt.f32 %v49_v38 }
  0xbf   :  { %v137_v35 = vmul.f32 %v342_v13, %v471_v20  ;;  %v344_v37 = vpop.eup %343 }
  0xc0   :  { %v136_v39 = vmul.f32 %v344_v37, %v473_v21 }
  0xc1   :  { %288 = vmatpush3.xpose.msra.mxu0 %v142_v6 }
  0xc2   :  { %289 = vmatprep.subr.mxu0 %v404_v30  ;;  %v346_v17 = vpop.eup %345 }
  0xc3   :  { %v135_v40 = vmul.f32 %v346_v17, %v479_v24  ;;  %v348_v41 = vpop.eup %347 }
  0xc4   :  { %v134_v20 = vmul.f32 %v348_v41, %v481_v25 }
  0xc5   :  { %290 = vmatpush3.xpose.msra.mxu0 %v141_v11 }
  0xc6   :  { %291 = vmatprep.subr.mxu0 %v404_v30  ;;  %v350_v42 = vpop.eup %349 }
  0xc7   :  { %v133_v43 = vmul.f32 %v350_v42, %v487_v28  ;;  %v352_v21 = vpop.eup %351  ;;  %v234_v28 = vlaneseq }
  0xc8   :  { %v132_v45 = vmul.f32 %v352_v21, %v489_v29  ;;  %v239_v29 = vpop.permute.xlu1 %238 }
  0xc9   :  { %292 = vmatpush3.xpose.msra.mxu0 %v140_v18  ;;  %v235_v53 = vand.u32 127, %v234_v28 }
  0xca   :  { %293 = vmatprep.subr.mxu0 %v404_v30 }
  0xcb   :  { %v354_v44 = vpop.eup %353  ;;  %vm240_vm3 = vcmp.eq.s32.totalorder %v235_v53, %v239_v29 }
  0xcc   :  { %v51_v24 = vmul.f32 %v354_v44, %v499_v33 }
  0xcd   :  { %294 = vmatpush3.xpose.msra.mxu0 %v139_v23 }
  0xce   :  { %295 = vmatprep.subr.mxu0 %v404_v30 }
  0xd1   :  { %296 = vmatpush3.xpose.msra.mxu0 %v138_v31 }
  0xd2   :  { %297 = vmatprep.subr.mxu0 %v404_v30 }
  0xd5   :  { %298 = vmatpush3.xpose.msra.mxu0 %v137_v35 }
  0xd6   :  { %299 = vmatprep.subr.mxu0 %v404_v30 }
  0xd9   :  { %300 = vmatpush3.xpose.msra.mxu0 %v136_v39 }
  0xda   :  { %301 = vmatprep.subr.mxu0 %v404_v30 }
  0xdd   :  { %302 = vmatpush3.xpose.msra.mxu0 %v135_v40 }
  0xde   :  { %303 = vmatprep.subr.mxu0 %v404_v30 }
  0xe1   :  { %304 = vmatpush3.xpose.msra.mxu0 %v134_v20 }
  0xe2   :  { %305 = vmatprep.subr.mxu0 %v404_v30 }
  0xe5   :  { %306 = vmatpush3.xpose.msra.mxu0 %v133_v43 }
  0xe6   :  { %307 = vmatprep.subr.mxu0 %v404_v30 }
  0xe9   :  { %308 = vmatpush3.xpose.msra.mxu0 %v132_v45 }
  0xec   :  { %310 = vmatmul.mubr.f32.vlgmr.msra.gmra.mxu0 %v51_v24 }
 0x1ac   :  { %v214_v25 = vpop.f32.mrf.mxu0 }
 0x1ad   :  { %v218_v46 = vmul.f32 %v214_v25, %v214_v25  ;;  %v228_v55 = vmul.f32 0.87758255, %v214_v25  ;;  %v259_v56 = vadd.f32 -0.23971277, %v214_v25  ;;  %vm231_vm4 = vcmp.gt.f32.partialorder %v214_v25, -0.87758255 }
 0x1ae   :  { %v311_v47 = vpop.f32.mrf.mxu0 }
 0x1af   :  { %v219_v48 = vsub.f32 1.0, %v218_v46 }
 0x1b1   :  { %v220_v49 = vmax.f32 %v219_v48, 0.0 }
 0x1b3   :  { %355 = vrsqrt.f32 %v220_v49  ;;  %vm223_vm1 = vcmp.eq.f32.partialorder %v220_v49, inf  ;;  %v226_v52 = vand.u32 2147483648, %v220_v49  ;;  %vm225_vm2 = vcmp.eq.f32.partialorder %v220_v49, 0.0 }
 0x1c0   :  { %v356_v50 = vpop.eup %355 }
 0x1c1   :  { %v222_v51 = vmul.f32 %v356_v50, %v220_v49 }
 0x1c3   :  { %v224_v54 = vsel %vm223_vm1, %v220_v49, %v222_v51 }
 0x1c4   :  { %v227_v30 = vsel %vm225_vm2, %v226_v52, %v224_v54 }
 0x1c5   :  { %v229_v33 = vmul.f32 0.47942555, %v227_v30 }
 0x1c7   :  { %v230_v57 = vsub.f32 %v228_v55, %v229_v33 }
 0x1c9   :  { %v233_v58 = vsel %vm231_vm4, %v230_v57, %v259_v56 }
 0x1ca   :  { %v241_v59 = vsel %vm240_vm3, %v233_v58, %v214_v25 }
 0x1cb   :  { %v242_v60 = vmul.f32 30.0, %v241_v59 }
 0x1cd   :  { %243 = vst [vmem:[#allocation5] sm:$0xff] %v242_v60 }
 0x1ce   :  { %388 = shalt.err (!%p385_p9)
}
 0x1cf   :  { %253 = dma.vmem_to_hbm [thread:$0]  %s251_s2, 128, %s545_s3, [#allocation4]  }
 0x1d0   :  { %399 = dma.done.wait [#allocation4], 128  }
 0x1d1   :  { %400 = vsyncadd [#allocation4], 4294967168 }
 0x1d2   :  { %257 = vsyncpa [#allocation3], 1 }
 0x1d3   :  { %258 = vsyncpa [#allocation4], 1 }

</bundles_post_ra>
